<compile_context>
chip_gen: v7x
topology: tpu7x:2x2x1
jax: 0.10.0
libtpu: 0.0.40
codegen_flags: <defaults>
</compile_context>

<pallas_src>
import jax
import jax.numpy as jnp
from jax import lax
from jax.experimental import pallas as pl
from jax.experimental.pallas import tpu as pltpu


def _jitter_kernel(idx_ref, x_ref, o_ref):
    """Single-pass shift+select jitter on a (row_tile, T) tile.

    idx_ref: (1, T) int32 with idx[t] in {t-1, t, t+1}; padded tail has
             idx[t] == t (no-op).
    x_ref / o_ref: (row_tile, T) tiles; T is a multiple of 128 and row_tile a
             multiple of 8, so the lane rotates below are natively supported.
    """
    x = x_ref[...]
    if x.dtype.itemsize != 4:          # lane rotate wants 32-bit lanes
        x = x.astype(jnp.float32)
    rows, t = x.shape

    lane = lax.broadcasted_iota(jnp.int32, (rows, t), 1)

    # Both single-step lane rotations of the data (XLU; spare slots here).
    x_a = pltpu.roll(x, 1, axis=1)
    x_b = pltpu.roll(x, t - 1, axis=1)

    # Resolve the rotate direction convention at run time with an iota probe
    # (one extra int rotate + a few selects: pure XLU/VPU filler in a
    # memory-bound kernel, keeps the kernel robust across jax versions).
    # Under jnp.roll semantics, probe[:, j] == j-1 everywhere.
    probe = pltpu.roll(lane, 1, axis=1)
    expected_prev = jnp.where(lane == 0, t - 1, lane - 1)
    is_fwd = probe == expected_prev
    x_prev = jnp.where(is_fwd, x_a, x_b)   # x_prev[:, j] = x[:, j-1]
    x_next = jnp.where(is_fwd, x_b, x_a)   # x_next[:, j] = x[:, j+1]

    idx_row = idx_ref[...]                 # (1, t), broadcasts over rows
    out = jnp.where(idx_row < lane, x_prev, x)
    out = jnp.where(idx_row > lane, x_next, out)
    o_ref[...] = out.astype(o_ref.dtype)


def sample_jitter_indices(key, length, probability=0.12):
    """Per-time-step gather indices: idx[t] in {t-1, t, t+1} (edges handled)."""
    positions = jnp.arange(length, dtype=jnp.int32)
    k_replace, k_dir = jax.random.split(key)
    replace = jax.random.bernoulli(k_replace, probability, (length,))
    rand_dir = jnp.where(
        jax.random.bernoulli(k_dir, 0.5, (length,)), jnp.int32(1), jnp.int32(-1)
    )
    # Edge handling: t==0 -> +1, t==length-1 -> -1, else random +/-1.
    direction = jnp.where(
        positions == 0,
        jnp.int32(1),
        jnp.where(positions == length - 1, jnp.int32(-1), rand_dir),
    )
    return jnp.where(replace, positions + direction, positions).astype(jnp.int32)


def jitter_from_indices(quantized, idx):
    """out[..., t] = quantized[..., idx[t]] for (B, C, T) input, idx[t] in {t-1,t,t+1}."""
    B, C, T = quantized.shape
    R = B * C
    # Hardware-aligned padded extents so the in-kernel lane rotate is natively
    # supported for any shape (no-op when already (8,128)-aligned).
    Rp = ((R + 7) // 8) * 8
    Tp = ((T + 127) // 128) * 128

    x2 = quantized.reshape(R, T)          # free: contiguous, no transpose
    if (Rp, Tp) != (R, T):
        x2 = jnp.pad(x2, ((0, Rp - R), (0, Tp - T)))

    idx = idx.astype(jnp.int32)
    if Tp != T:
        idx = jnp.concatenate([idx, jnp.arange(T, Tp, dtype=jnp.int32)])
    idx_row = idx[None, :]                # (1, Tp)

    # Row tile: multiple of 8 sublanes, sized so in+out double buffers stay
    # well inside the scoped-VMEM defaults on v5e/v6e/v7x.
    itemsize = jnp.dtype(quantized.dtype).itemsize
    rows_budget = (2 * 1024 * 1024) // max(1, Tp * itemsize)
    row_tile = min(Rp, max(8, (rows_budget // 8) * 8))
    grid = (pl.cdiv(Rp, row_tile),)

    out2 = pl.pallas_call(
        _jitter_kernel,
        out_shape=jax.ShapeDtypeStruct((Rp, Tp), quantized.dtype),
        grid=grid,
        in_specs=[
            pl.BlockSpec((1, Tp), lambda r: (0, 0)),
            pl.BlockSpec((row_tile, Tp), lambda r: (r, 0)),
        ],
        out_specs=pl.BlockSpec((row_tile, Tp), lambda r: (r, 0)),
        compiler_params=pltpu.CompilerParams(
            dimension_semantics=("parallel",),
        ),
    )(idx_row, x2)

    return out2[:R, :T].reshape(B, C, T)


def jitter(quantized, key, probability=0.12):
    """Jitter forward pass for (B, C, T) input (PyTorch NCL convention)."""
    idx = sample_jitter_indices(key, quantized.shape[2], probability)
    return jitter_from_indices(quantized, idx)


if __name__ == "__main__":
    key = jax.random.PRNGKey(0)
    k_data, k_jitter = jax.random.split(key)

    B, C, T = 2, 4, 16  # small shapes consistent with (batch, channels, time)
    quantized = jax.random.normal(k_data, (B, C, T), dtype=jnp.float32)

    idx = sample_jitter_indices(k_jitter, T, probability=0.12)
    out = jitter_from_indices(quantized, idx)
    out = jax.block_until_ready(out)

    # Pure-JAX reference of the gather semantics for the same sampled indices.
    ref = quantized[:, :, idx]
    assert out.shape == quantized.shape
    assert jnp.allclose(out, ref), "Pallas jitter mismatch"

    print("KERNEL_OK")
</pallas_src>

<mosaic_0001>
module attributes {stable_mosaic.version = 11 : i64} {
  func.func @_jitter_kernel(%arg0: i32, %arg1: memref<1x128xi32, #tpu.memory_space<vmem>>, %arg2: memref<8x128xf32, #tpu.memory_space<vmem>>, %arg3: memref<8x128xf32, #tpu.memory_space<vmem>>) attributes {dimension_semantics = [#tpu.dimension_semantics<parallel>], iteration_bounds = array<i64: 1>, scalar_prefetch = 0 : i64, scratch_operands = 0 : i64, tpu.core_type = #tpu.core_type<tc>, window_params = [{pipeline_mode = #tpu.pipeline_mode<synchronous>, transform_indices = @transform_0, window_bounds = array<i64: 1, 128>}, {transform_indices = @transform_1, window_bounds = array<i64: 8, 128>}, {transform_indices = @transform_2, window_bounds = array<i64: 8, 128>}]} {
    %c0 = arith.constant 0 : index
    %c0_0 = arith.constant 0 : index
    %0 = vector.load %arg2[%c0, %c0_0] : memref<8x128xf32, #tpu.memory_space<vmem>>, vector<8x128xf32>
    %1 = tpu.iota {dimensions = array<i32: 1>} : vector<8x128xi32>
    %c1_i32 = arith.constant 1 : i32
    %2 = tpu.dynamic_rotate %0 by %c1_i32 dim 1 : vector<8x128xf32>, i32 -> vector<8x128xf32>
    %c127_i32 = arith.constant 127 : i32
    %3 = tpu.dynamic_rotate %0 by %c127_i32 dim 1 : vector<8x128xf32>, i32 -> vector<8x128xf32>
    %c1_i32_1 = arith.constant 1 : i32
    %4 = tpu.dynamic_rotate %1 by %c1_i32_1 dim 1 : vector<8x128xi32>, i32 -> vector<8x128xi32>
    %c0_i32 = arith.constant 0 : i32
    %5 = vector.broadcast %c0_i32 : i32 to vector<8x128xi32>
    %6 = arith.cmpi eq, %1, %5 : vector<8x128xi32>
    %c1_i32_2 = arith.constant 1 : i32
    %7 = vector.broadcast %c1_i32_2 : i32 to vector<8x128xi32>
    %8 = arith.subi %1, %7 : vector<8x128xi32>
    %c127_i32_3 = arith.constant 127 : i32
    %9 = vector.broadcast %c127_i32_3 : i32 to vector<8x128xi32>
    %10 = arith.select %6, %9, %8 : vector<8x128xi1>, vector<8x128xi32>
    %11 = arith.cmpi eq, %4, %10 : vector<8x128xi32>
    %12 = arith.select %11, %2, %3 : vector<8x128xi1>, vector<8x128xf32>
    %13 = arith.select %11, %3, %2 : vector<8x128xi1>, vector<8x128xf32>
    %c0_4 = arith.constant 0 : index
    %c0_5 = arith.constant 0 : index
    %14 = vector.load %arg1[%c0_4, %c0_5] : memref<1x128xi32, #tpu.memory_space<vmem>>, vector<1x128xi32>
    %15 = vector.broadcast %14 : vector<1x128xi32> to vector<8x128xi32>
    %16 = arith.cmpi slt, %15, %1 : vector<8x128xi32>
    %17 = arith.select %16, %12, %0 : vector<8x128xi1>, vector<8x128xf32>
    %18 = vector.broadcast %14 : vector<1x128xi32> to vector<8x128xi32>
    %19 = arith.cmpi sgt, %18, %1 : vector<8x128xi32>
    %20 = arith.select %19, %13, %17 : vector<8x128xi1>, vector<8x128xf32>
    %c0_6 = arith.constant 0 : index
    %c0_7 = arith.constant 0 : index
    %21 = vector.load %arg3[%c0_6, %c0_7] : memref<8x128xf32, #tpu.memory_space<vmem>>, vector<8x128xf32>
    tpu.vector_store %arg3[%c0_6, %c0_7], %20 {strides = array<i32>} : memref<8x128xf32, #tpu.memory_space<vmem>>, vector<8x128xf32>,
    return
  }
  func.func @transform_0(%arg0: i32) -> (i32, i32) {
    %c0_i32 = arith.constant 0 : i32
    %c0_i32_0 = arith.constant 0 : i32
    %c0_i32_1 = arith.constant 0 : i32
    return %c0_i32, %c0_i32_0 : i32, i32
  }
  func.func @transform_1(%arg0: i32) -> (i32, i32) {
    %c0_i32 = arith.constant 0 : i32
    %c0_i32_0 = arith.constant 0 : i32
    return %arg0, %c0_i32 : i32, i32
  }
  func.func @transform_2(%arg0: i32) -> (i32, i32) {
    %c0_i32 = arith.constant 0 : i32
    %c0_i32_0 = arith.constant 0 : i32
    return %arg0, %c0_i32 : i32, i32
  }
}

</mosaic_0001>

<bundles_post_ra>
// kernel: tpu_custom_call.1
= control target key start
LH: loop header
LB: loop body
LE: loop exit
PB: predicated region body
PF: predicated region fallthrough
CT: control target
= control target key end

     0   :  { %7 = vsyncpa [#allocation3], 0  ;;  %s212_s0 = inlined_call_operand.hbm [shape: s32[1,128], index: 0, kind: input, shape index: {}]   ;;  %s213_s1 = inlined_call_operand.hbm [shape: f32[8,128], index: 1, kind: input, shape index: {}]   ;;  %s214_s2 = inlined_call_operand.hbm [shape: f32[8,128], index: 2, kind: output, shape index: {}]  }
   0x1   :  { %8 = vsyncpa [#allocation6], 0 }
   0x2   :  { %9 = vsyncpa [#allocation4], 0  ;;  %s156_s9 = smov [#allocation2]   ;;  %s157_s11 = smov [#allocation5]  }
   0x3   :  { %s16_s10 = sshll.u32 %s156_s9, 4  ;;  %s26_s12 = sshll.u32 %s157_s11, 4  ;;  %s17_s10 = int_to_ptr.vmem [resolvable:$true] %s16_s10  ;;  %s27_s12 = int_to_ptr.vmem [resolvable:$true] %s26_s12 }
   0x4   :  { %s84_s15 = scalar_lea.hbm %s212_s0, 16 }
   0x5   :  { %p85_p0 = scmp.ne.s32.totalorder %s212_s0, %s84_s15  ;;  %p88_p1 = scmp.lt.u32.totalorder %s84_s15, %s212_s0 }
   0x7   :  { %p90_p2 = pnand %p88_p1, %p85_p0 }
   0x9   :  { %93 = shalt.err (!%p90_p2)
}
   0xa   :  { %s94_s20 = scalar_lea.vmem %s17_s10, 16  ;;  %s98_s21 = scalar_lea.vmem %s17_s10, 32 }
   0xb   :  { %p95_p3 = scmp.ne.s32.totalorder %s17_s10, %s94_s20  ;;  %p99_p4 = scmp.lt.s32.totalorder %s17_s10, %s17_s10 }
   0xc   :  { %p100_p5 = scmp.lt.s32.totalorder %s98_s21, %s94_s20 }
   0xe   :  { %p101_p6 = por %p100_p5, %p99_p4 }
  0x10   :  { %p102_p7 = pnand %p101_p6, %p95_p3 }
  0x12   :  { %105 = shalt.err (!%p102_p7)
}
  0x13   :  { %19 = dma.hbm_to_vmem [thread:$0]  %s212_s0, 16, %s17_s10, [#allocation3]  }
  0x14   :  { %s106_s26 = scalar_lea.hbm %s213_s1, 128 }
  0x15   :  { %p107_p8 = scmp.ne.s32.totalorder %s213_s1, %s106_s26  ;;  %p110_p9 = scmp.lt.u32.totalorder %s106_s26, %s213_s1 }
  0x17   :  { %p112_p10 = pnand %p110_p9, %p107_p8 }
  0x19   :  { %115 = shalt.err (!%p112_p10)
}
  0x1a   :  { %s116_s3 = scalar_lea.vmem %s27_s12, 128  ;;  %p121_p12 = scmp.lt.s32.totalorder %s27_s12, %s27_s12 }
  0x1b   :  { %p117_p11 = scmp.ne.s32.totalorder %s27_s12, %s116_s3  ;;  %p122_p13 = scmp.lt.s32.totalorder %s116_s3, %s116_s3 }
  0x1d   :  { %p123_p0 = por %p122_p13, %p121_p12 }
  0x1f   :  { %p124_p1 = pnand %p123_p0, %p117_p11 }
  0x21   :  { %127 = shalt.err (!%p124_p1)
}
  0x22   :  { %29 = dma.hbm_to_vmem [thread:$0]  %s213_s1, 128, %s27_s12, [#allocation6]  }
  0x23   :  { %150 = dma.done.wait [#allocation3], 16  }
  0x24   :  { %151 = vsyncadd [#allocation3], 4294967280 }
  0x25   :  { %152 = dma.done.wait [#allocation6], 128  }
  0x26   :  { %153 = vsyncadd [#allocation6], 4294967168  ;;  %v37_v0 = vlaneseq  ;;  %s158_s5 = smov 1   ;;  %v36_v2 = vld [vmem:[#allocation5] sm:$0xff]  ;;  %s159_s6 = smov 127  }
  0x27   :  { %41 = vrot.lane.b32.xlu1 %v36_v2, %s159_s6  ;;  %v78_v5 = vld [vmem:[#allocation2] ss:$0 sm:$0xff]  ;;  %s160_s7 = smov [#allocation7]  }
  0x28   :  { %v38_v1 = vand.u32 127, %v37_v0  ;;  %s67_s1 = sshll.u32 %s160_s7, 4  ;;  %s68_s1 = int_to_ptr.vmem [resolvable:$true] %s67_s1 }
  0x29   :  { %s128_s8 = scalar_lea.vmem %s68_s1, 128  ;;  %p133_p3 = scmp.lt.s32.totalorder %s68_s1, %s68_s1 }
  0x2a   :  { %43 = vrot.lane.b32.xlu0 %v38_v1, %s158_s5  ;;  %v77_v3 = vadd.s32 4294967295, %v38_v1  ;;  %vm45_vm0 = vcmp.eq.s32.totalorder %v38_v1, 0  ;;  %vm56_vm1 = vcmp.lt.s32.totalorder %v78_v5, %v38_v1  ;;  %vm58_vm3 = vcmp.gt.s32.totalorder %v78_v5, %v38_v1  ;;  %p129_p2 = scmp.ne.s32.totalorder %s68_s1, %s128_s8  ;;  %p134_p4 = scmp.lt.s32.totalorder %s128_s8, %s128_s8 }
  0x2c   :  { %v47_v6 = vsel %vm45_vm0, 127, %v77_v3  ;;  %p135_p5 = por %p134_p4, %p133_p3 }
  0x2e   :  { %39 = vrot.lane.b32.xlu0 %v36_v2, %s158_s5  ;;  %p136_p6 = pnand %p135_p5, %p129_p2 }
  0x99   :  { %v42_v7 = vpop.permute.xlu1 %41 }
  0x9c   :  { %v44_v4 = vpop.permute.xlu0 %43 }
  0x9d   :  { %vm48_vm2 = vcmp.eq.s32.totalorder %v44_v4, %v47_v6 }
  0xa0   :  { %v40_v8 = vpop.permute.xlu0 %39 }
  0xa1   :  { %v49_v9 = vsel %vm48_vm2, %v40_v8, %v42_v7  ;;  %v50_v10 = vsel %vm48_vm2, %v42_v7, %v40_v8 }
  0xa2   :  { %v57_v11 = vsel %vm56_vm1, %v49_v9, %v36_v2 }
  0xa3   :  { %v59_v12 = vsel %vm58_vm3, %v50_v10, %v57_v11 }
  0xa4   :  { %60 = vst [vmem:[#allocation7] sm:$0xff] %v59_v12 }
  0xa5   :  { %139 = shalt.err (!%p136_p6)
}
  0xa6   :  { %s140_s11 = scalar_lea.hbm %s214_s2, 128 }
  0xa7   :  { %p141_p7 = scmp.ne.s32.totalorder %s214_s2, %s140_s11  ;;  %p144_p8 = scmp.lt.u32.totalorder %s140_s11, %s214_s2 }
  0xa9   :  { %p146_p9 = pnand %p144_p8, %p141_p7 }
  0xab   :  { %149 = shalt.err (!%p146_p9)
}
  0xac   :  { %70 = dma.vmem_to_hbm [thread:$0]  %s68_s1, 128, %s214_s2, [#allocation4]  }
  0xad   :  { %154 = dma.done.wait [#allocation4], 128  }
  0xae   :  { %155 = vsyncadd [#allocation4], 4294967168 }
  0xaf   :  { %74 = vsyncpa [#allocation3], 1 }
  0xb0   :  { %75 = vsyncpa [#allocation6], 1 }
  0xb1   :  { %76 = vsyncpa [#allocation4], 1 }

</bundles_post_ra>
